<compile_context>
chip_gen: v7x
topology: tpu7x:2x2x1
jax: 0.10.0
libtpu: 0.0.40
codegen_flags: <defaults>
</compile_context>

<pallas_src>
import jax
import jax.numpy as jnp
from jax.experimental import pallas as pl
from jax.experimental.pallas import tpu as pltpu

# ---------------- problem sizes (small, consistent with the module) ----------------
B = 2                 # batch
D_IN = 8              # input_size
H = 32                # hidden_dim
SEQ_LEN = 32          # seq_len (must be divisible by input_size)
R = SEQ_LEN // D_IN   # relative_seq_len = 4
T_ENC = R             # encoder sequence length (autoencoder reconstructs its input)
B_PAD = 8             # batch padded to fill all 8 sublanes of a vreg

G4H = 4 * H           # 128 (encoder gate width)
G4D = 4 * D_IN        # 32  (decoder gate width)

# ---- packed parameter slab layout (rows; all sections 8-row / lane-0 aligned) ----
ROW_WIH_E = 0                           # (D_IN, 4H)        rows 0..7
ROW_WHH_E = ROW_WIH_E + D_IN            # (H, 4H)           rows 8..39
ROW_B_E   = ROW_WHH_E + H               # (1, 4H)           row  40
ROW_WIH_D = ROW_B_E + 8                 # (H, 4*D_IN)       rows 48..79
ROW_B_D   = ROW_WIH_D + H               # (1, 4*D_IN)       row  80
ROW_BFC   = ROW_B_D + 1                 # (1, SEQ_LEN)      row  81
ROW_FUSED = ROW_B_D + 8                 # ((R-1)*D_IN, 4*D_IN+SEQ_LEN)  rows 88..111
ROW_WFC_L = ROW_FUSED + (R - 1) * D_IN  # (D_IN, SEQ_LEN)   rows 112..119
SLAB_ROWS = ROW_WFC_L + D_IN            # 120
SLAB_LANES = 128


def lstm_ae_kernel(x2d_ref, slab_ref, out_ref):
    x2d = x2d_ref[...]                                     # (T_ENC*B_PAD, D_IN), time-major
    wih_e = slab_ref[ROW_WIH_E:ROW_WIH_E + D_IN, :]        # (8, 128)   i/f/o cols pre-scaled
    whh_e = slab_ref[ROW_WHH_E:ROW_WHH_E + H, :]           # (32, 128)  i/f/o cols pre-scaled
    b_e   = slab_ref[ROW_B_E:ROW_B_E + 1, :]               # (1, 128)
    wih_d = slab_ref[ROW_WIH_D:ROW_WIH_D + H, :G4D]        # (32, 32)
    b_d   = slab_ref[ROW_B_D:ROW_B_D + 1, :G4D]            # (1, 32)
    bfc   = slab_ref[ROW_BFC:ROW_BFC + 1, :SEQ_LEN]        # (1, 32)

    def lstm_act(gates, hid):
        # i/f/o columns were pre-scaled by 0.5 host-side, so:
        #   sigmoid(z) = 0.5 * tanh(z/2) + 0.5   (one EUP pass + one VPU fma)
        t = jnp.tanh(gates)
        s = 0.5 * t + 0.5
        i = s[:, 0 * hid:1 * hid]
        f = s[:, 1 * hid:2 * hid]
        g = t[:, 2 * hid:3 * hid]
        o = s[:, 3 * hid:4 * hid]
        return i, f, g, o

    # ----- encoder: all input projections in one batched matmul (off the recurrence) -----
    xw = jnp.dot(x2d, wih_e, preferred_element_type=jnp.float32) + b_e   # (T*Bp, 128)

    # step 0: h = c = 0  ->  no recurrent matmul needed
    i, f, g, o = lstm_act(xw[0:B_PAD, :], H)
    c = i * g
    h = o * jnp.tanh(c)
    for t_step in range(1, T_ENC):                         # small static trip count -> unrolled
        gates = xw[t_step * B_PAD:(t_step + 1) * B_PAD, :] + jnp.dot(
            h, whh_e, preferred_element_type=jnp.float32)  # (Bp, 128) = one vreg
        i, f, g, o = lstm_act(gates, H)
        c = f * c + i * g
        h = o * jnp.tanh(c)

    # ----- encoder -> decoder handoff: decoder input is constant (= final hidden) -----
    dec_in = jnp.dot(h, wih_d, preferred_element_type=jnp.float32) + b_d  # (Bp, 32)

    # ----- decoder step 0: hd = cd = 0  ->  no recurrent matmul needed -----
    i, f, g, o = lstm_act(dec_in, D_IN)
    cd = i * g
    hd = o * jnp.tanh(cd)
    y = bfc                                                # (1, SEQ_LEN), broadcasts on first add

    # ----- decoder steps 1..R-1: ONE fused matmul per step: hd @ [whh_d | wfc_block] -----
    # flat[:, (r-1)*D_in : r*D_in] == hd_r, so the step-r matmul (operand hd_r) also
    # produces the previous step's Linear contribution for free.
    for r in range(1, R):
        row0 = ROW_FUSED + (r - 1) * D_IN
        fused = slab_ref[row0:row0 + D_IN, :G4D + SEQ_LEN]               # (8, 64)
        res = jnp.dot(hd, fused, preferred_element_type=jnp.float32)     # (Bp, 64)
        gates = dec_in + res[:, :G4D]
        y = y + res[:, G4D:G4D + SEQ_LEN]
        i, f, g, o = lstm_act(gates, D_IN)
        cd = f * cd + i * g
        hd = o * jnp.tanh(cd)

    # ----- last decoder output's Linear contribution -----
    wfc_last = slab_ref[ROW_WFC_L:ROW_WFC_L + D_IN, :SEQ_LEN]            # (8, 32)
    y = y + jnp.dot(hd, wfc_last, preferred_element_type=jnp.float32)

    out_ref[...] = y                                       # single lane-dense (Bp, SEQ_LEN) store


# --------------------------- host-side parameter packing ---------------------------
def _gate_scale(hid):
    # gate order i | f | g | o ; scale i/f/o by 0.5, keep g at 1.0
    return jnp.concatenate([
        jnp.full((2 * hid,), 0.5, jnp.float32),
        jnp.ones((hid,), jnp.float32),
        jnp.full((hid,), 0.5, jnp.float32),
    ])[None, :]


def pack_params(params):
    """Pre-scale gate columns, prebuild fused decoder RHS blocks, pack into one slab."""
    (wih_e, whh_e, b_e, wih_d, whh_d, b_d, wfc, bfc) = params
    se = _gate_scale(H)
    sd = _gate_scale(D_IN)
    wih_e_s, whh_e_s, b_e_s = wih_e * se, whh_e * se, b_e * se
    wih_d_s, whh_d_s, b_d_s = wih_d * sd, whh_d * sd, b_d * sd

    def pad_lanes(a):
        return jnp.pad(a, ((0, 0), (0, SLAB_LANES - a.shape[1])))

    fused_rows = [
        pad_lanes(jnp.concatenate(
            [whh_d_s, wfc[(r - 1) * D_IN:r * D_IN, :]], axis=1))   # (8, 64)
        for r in range(1, R)
    ]
    wfc_last = wfc[(R - 1) * D_IN:R * D_IN, :]                     # (8, 32)

    rows = [
        pad_lanes(wih_e_s),                          # rows 0..7
        pad_lanes(whh_e_s),                          # rows 8..39
        pad_lanes(b_e_s),                            # row  40
        jnp.zeros((7, SLAB_LANES), jnp.float32),     # rows 41..47 (pad)
        pad_lanes(wih_d_s),                          # rows 48..79
        pad_lanes(b_d_s),                            # row  80
        pad_lanes(bfc),                              # row  81
        jnp.zeros((6, SLAB_LANES), jnp.float32),     # rows 82..87 (pad)
    ] + fused_rows + [                               # rows 88..111
        pad_lanes(wfc_last),                         # rows 112..119
    ]
    slab = jnp.concatenate(rows, axis=0)
    assert slab.shape == (SLAB_ROWS, SLAB_LANES), slab.shape
    return slab


def lstm_ae_forward(x, slab):
    b, t, d = x.shape
    assert t == T_ENC and d == D_IN and b <= B_PAD
    # pad batch to 8 sublanes; time-major layout so the kernel slices whole 8-row tiles.
    x_p = jnp.pad(x, ((0, B_PAD - b), (0, 0), (0, 0)))
    x2d = jnp.transpose(x_p, (1, 0, 2)).reshape(T_ENC * B_PAD, D_IN)

    vmem = pl.BlockSpec(memory_space=pltpu.MemorySpace.VMEM)
    y = pl.pallas_call(
        lstm_ae_kernel,
        out_shape=jax.ShapeDtypeStruct((B_PAD, SEQ_LEN), jnp.float32),
        in_specs=[vmem, vmem],
        out_specs=vmem,
    )(x2d, slab)

    # un-pad + reshape (free in XLA)
    return y[:b].reshape(b, R, D_IN)


# ---------------- pure-JAX reference (mirrors the PyTorch forward) ----------------
def _lstm_step_ref(x_t, h, c, w_ih, w_hh, bias, hid):
    gates = x_t @ w_ih + h @ w_hh + bias
    i = jax.nn.sigmoid(gates[:, 0 * hid:1 * hid])
    f = jax.nn.sigmoid(gates[:, 1 * hid:2 * hid])
    g = jnp.tanh(gates[:, 2 * hid:3 * hid])
    o = jax.nn.sigmoid(gates[:, 3 * hid:4 * hid])
    c_new = f * c + i * g
    return o * jnp.tanh(c_new), c_new


def _lstm_ref(x, w_ih, w_hh, bias, hid):
    h = jnp.zeros((x.shape[0], hid), jnp.float32)
    c = jnp.zeros((x.shape[0], hid), jnp.float32)
    hs = []
    for t in range(x.shape[1]):
        h, c = _lstm_step_ref(x[:, t, :], h, c, w_ih, w_hh, bias, hid)
        hs.append(h)
    return jnp.stack(hs, axis=1), h


def reference_forward(x, params):
    (wih_e, whh_e, b_e, wih_d, whh_d, b_d, wfc, bfc) = params
    _, hidden = _lstm_ref(x, wih_e, whh_e, b_e, H)                # final hidden (B, H)
    hidden_rep = jnp.repeat(hidden[:, None, :], R, axis=1)        # (B, R, H)
    dec_out, _ = _lstm_ref(hidden_rep, wih_d, whh_d, b_d, D_IN)   # (B, R, D_in)
    flat = dec_out.reshape(x.shape[0], SEQ_LEN)
    y = flat @ wfc + bfc
    return y.reshape(x.shape[0], R, D_IN)


def make_params(key):
    ks = jax.random.split(key, 8)
    k_e = 1.0 / jnp.sqrt(H)
    k_d = 1.0 / jnp.sqrt(D_IN)
    k_fc = 1.0 / jnp.sqrt(SEQ_LEN)
    u = lambda k, shape, s: jax.random.uniform(k, shape, jnp.float32, -s, s)
    wih_e = u(ks[0], (D_IN, 4 * H), k_e)        # transposed PyTorch weight_ih_l0
    whh_e = u(ks[1], (H, 4 * H), k_e)           # transposed weight_hh_l0
    b_e = u(ks[2], (1, 4 * H), k_e)             # b_ih + b_hh combined
    wih_d = u(ks[3], (H, 4 * D_IN), k_d)
    whh_d = u(ks[4], (D_IN, 4 * D_IN), k_d)
    b_d = u(ks[5], (1, 4 * D_IN), k_d)
    wfc = u(ks[6], (SEQ_LEN, SEQ_LEN), k_fc)    # used as y = x @ wfc + bfc
    bfc = u(ks[7], (1, SEQ_LEN), k_fc)
    return (wih_e, whh_e, b_e, wih_d, whh_d, b_d, wfc, bfc)


if __name__ == "__main__":
    key = jax.random.PRNGKey(0)
    kx, kp = jax.random.split(key)
    x = jax.random.normal(kx, (B, T_ENC, D_IN), jnp.float32)
    params = make_params(kp)

    slab = pack_params(params)          # one-time host-side weight prep
    out = lstm_ae_forward(x, slab)
    out = jax.block_until_ready(out)

    ref = reference_forward(x, params)
    assert out.shape == (B, R, D_IN), out.shape
    # sigmoid-via-tanh gives ~1-ulp differences vs jax.nn.sigmoid; still tiny.
    assert jnp.allclose(out, ref, atol=2e-5, rtol=2e-5), float(jnp.max(jnp.abs(out - ref)))

    print("KERNEL_OK")
</pallas_src>

<mosaic_0001>
module attributes {stable_mosaic.version = 11 : i64} {
  func.func @lstm_ae_kernel(%arg0: memref<32x8xf32, #tpu.memory_space<vmem>>, %arg1: memref<120x128xf32, #tpu.memory_space<vmem>>, %arg2: memref<8x32xf32, #tpu.memory_space<vmem>>) attributes {dimension_semantics = [], scalar_prefetch = 0 : i64, scratch_operands = 0 : i64, tpu.core_type = #tpu.core_type<tc>} {
    %c0 = arith.constant 0 : index
    %c0_0 = arith.constant 0 : index
    %0 = vector.load %arg0[%c0, %c0_0] : memref<32x8xf32, #tpu.memory_space<vmem>>, vector<32x8xf32>
    %c0_1 = arith.constant 0 : index
    %c0_2 = arith.constant 0 : index
    %1 = vector.load %arg1[%c0_1, %c0_2] : memref<120x128xf32, #tpu.memory_space<vmem>>, vector<8x128xf32>
    %c8 = arith.constant 8 : index
    %c0_3 = arith.constant 0 : index
    %2 = vector.load %arg1[%c8, %c0_3] : memref<120x128xf32, #tpu.memory_space<vmem>>, vector<32x128xf32>
    %c40 = arith.constant 40 : index
    %c0_4 = arith.constant 0 : index
    %3 = vector.load %arg1[%c40, %c0_4] : memref<120x128xf32, #tpu.memory_space<vmem>>, vector<1x128xf32>
    %c48 = arith.constant 48 : index
    %c0_5 = arith.constant 0 : index
    %4 = vector.load %arg1[%c48, %c0_5] : memref<120x128xf32, #tpu.memory_space<vmem>>, vector<32x32xf32>
    %c80 = arith.constant 80 : index
    %c0_6 = arith.constant 0 : index
    %5 = vector.load %arg1[%c80, %c0_6] : memref<120x128xf32, #tpu.memory_space<vmem>>, vector<1x32xf32>
    %c81 = arith.constant 81 : index
    %c0_7 = arith.constant 0 : index
    %6 = vector.load %arg1[%c81, %c0_7] : memref<120x128xf32, #tpu.memory_space<vmem>>, vector<1x32xf32>
    %cst = arith.constant dense<0.000000e+00> : vector<32x128xf32>
    %7 = tpu.matmul %0, %1, %cst {dimension_numbers = #tpu.dot_dimension_numbers<[1], [0], [0], [1], [0, 0, 1, 1], [], []>} : vector<32x8xf32>, vector<8x128xf32>, vector<32x128xf32> -> vector<32x128xf32>
    %8 = vector.broadcast %3 : vector<1x128xf32> to vector<32x128xf32>
    %9 = arith.addf %7, %8 : vector<32x128xf32>
    %10 = vector.extract_strided_slice %9 {offsets = [0, 0], sizes = [8, 128], strides = [1, 1]} : vector<32x128xf32> to vector<8x128xf32>
    %11 = math.tanh %10 : vector<8x128xf32>
    %cst_8 = arith.constant 5.000000e-01 : f32
    %12 = vector.broadcast %cst_8 : f32 to vector<8x128xf32>
    %13 = arith.mulf %12, %11 : vector<8x128xf32>
    %cst_9 = arith.constant 5.000000e-01 : f32
    %14 = vector.broadcast %cst_9 : f32 to vector<8x128xf32>
    %15 = arith.addf %13, %14 : vector<8x128xf32>
    %16 = vector.extract_strided_slice %15 {offsets = [0, 0], sizes = [8, 32], strides = [1, 1]} : vector<8x128xf32> to vector<8x32xf32>
    %17 = vector.extract_strided_slice %11 {offsets = [0, 64], sizes = [8, 32], strides = [1, 1]} : vector<8x128xf32> to vector<8x32xf32>
    %18 = vector.extract_strided_slice %15 {offsets = [0, 96], sizes = [8, 32], strides = [1, 1]} : vector<8x128xf32> to vector<8x32xf32>
    %19 = arith.mulf %16, %17 : vector<8x32xf32>
    %20 = math.tanh %19 : vector<8x32xf32>
    %21 = arith.mulf %18, %20 : vector<8x32xf32>
    %22 = vector.extract_strided_slice %9 {offsets = [8, 0], sizes = [8, 128], strides = [1, 1]} : vector<32x128xf32> to vector<8x128xf32>
    %cst_10 = arith.constant dense<0.000000e+00> : vector<8x128xf32>
    %23 = tpu.matmul %21, %2, %cst_10 {dimension_numbers = #tpu.dot_dimension_numbers<[1], [0], [0], [1], [0, 0, 1, 1], [], []>} : vector<8x32xf32>, vector<32x128xf32>, vector<8x128xf32> -> vector<8x128xf32>
    %24 = arith.addf %22, %23 : vector<8x128xf32>
    %25 = math.tanh %24 : vector<8x128xf32>
    %cst_11 = arith.constant 5.000000e-01 : f32
    %26 = vector.broadcast %cst_11 : f32 to vector<8x128xf32>
    %27 = arith.mulf %26, %25 : vector<8x128xf32>
    %cst_12 = arith.constant 5.000000e-01 : f32
    %28 = vector.broadcast %cst_12 : f32 to vector<8x128xf32>
    %29 = arith.addf %27, %28 : vector<8x128xf32>
    %30 = vector.extract_strided_slice %29 {offsets = [0, 0], sizes = [8, 32], strides = [1, 1]} : vector<8x128xf32> to vector<8x32xf32>
    %31 = vector.extract_strided_slice %29 {offsets = [0, 32], sizes = [8, 32], strides = [1, 1]} : vector<8x128xf32> to vector<8x32xf32>
    %32 = vector.extract_strided_slice %25 {offsets = [0, 64], sizes = [8, 32], strides = [1, 1]} : vector<8x128xf32> to vector<8x32xf32>
    %33 = vector.extract_strided_slice %29 {offsets = [0, 96], sizes = [8, 32], strides = [1, 1]} : vector<8x128xf32> to vector<8x32xf32>
    %34 = arith.mulf %31, %19 : vector<8x32xf32>
    %35 = arith.mulf %30, %32 : vector<8x32xf32>
    %36 = arith.addf %34, %35 : vector<8x32xf32>
    %37 = math.tanh %36 : vector<8x32xf32>
    %38 = arith.mulf %33, %37 : vector<8x32xf32>
    %39 = vector.extract_strided_slice %9 {offsets = [16, 0], sizes = [8, 128], strides = [1, 1]} : vector<32x128xf32> to vector<8x128xf32>
    %cst_13 = arith.constant dense<0.000000e+00> : vector<8x128xf32>
    %40 = tpu.matmul %38, %2, %cst_13 {dimension_numbers = #tpu.dot_dimension_numbers<[1], [0], [0], [1], [0, 0, 1, 1], [], []>} : vector<8x32xf32>, vector<32x128xf32>, vector<8x128xf32> -> vector<8x128xf32>
    %41 = arith.addf %39, %40 : vector<8x128xf32>
    %42 = math.tanh %41 : vector<8x128xf32>
    %cst_14 = arith.constant 5.000000e-01 : f32
    %43 = vector.broadcast %cst_14 : f32 to vector<8x128xf32>
    %44 = arith.mulf %43, %42 : vector<8x128xf32>
    %cst_15 = arith.constant 5.000000e-01 : f32
    %45 = vector.broadcast %cst_15 : f32 to vector<8x128xf32>
    %46 = arith.addf %44, %45 : vector<8x128xf32>
    %47 = vector.extract_strided_slice %46 {offsets = [0, 0], sizes = [8, 32], strides = [1, 1]} : vector<8x128xf32> to vector<8x32xf32>
    %48 = vector.extract_strided_slice %46 {offsets = [0, 32], sizes = [8, 32], strides = [1, 1]} : vector<8x128xf32> to vector<8x32xf32>
    %49 = vector.extract_strided_slice %42 {offsets = [0, 64], sizes = [8, 32], strides = [1, 1]} : vector<8x128xf32> to vector<8x32xf32>
    %50 = vector.extract_strided_slice %46 {offsets = [0, 96], sizes = [8, 32], strides = [1, 1]} : vector<8x128xf32> to vector<8x32xf32>
    %51 = arith.mulf %48, %36 : vector<8x32xf32>
    %52 = arith.mulf %47, %49 : vector<8x32xf32>
    %53 = arith.addf %51, %52 : vector<8x32xf32>
    %54 = math.tanh %53 : vector<8x32xf32>
    %55 = arith.mulf %50, %54 : vector<8x32xf32>
    %56 = vector.extract_strided_slice %9 {offsets = [24, 0], sizes = [8, 128], strides = [1, 1]} : vector<32x128xf32> to vector<8x128xf32>
    %cst_16 = arith.constant dense<0.000000e+00> : vector<8x128xf32>
    %57 = tpu.matmul %55, %2, %cst_16 {dimension_numbers = #tpu.dot_dimension_numbers<[1], [0], [0], [1], [0, 0, 1, 1], [], []>} : vector<8x32xf32>, vector<32x128xf32>, vector<8x128xf32> -> vector<8x128xf32>
    %58 = arith.addf %56, %57 : vector<8x128xf32>
    %59 = math.tanh %58 : vector<8x128xf32>
    %cst_17 = arith.constant 5.000000e-01 : f32
    %60 = vector.broadcast %cst_17 : f32 to vector<8x128xf32>
    %61 = arith.mulf %60, %59 : vector<8x128xf32>
    %cst_18 = arith.constant 5.000000e-01 : f32
    %62 = vector.broadcast %cst_18 : f32 to vector<8x128xf32>
    %63 = arith.addf %61, %62 : vector<8x128xf32>
    %64 = vector.extract_strided_slice %63 {offsets = [0, 0], sizes = [8, 32], strides = [1, 1]} : vector<8x128xf32> to vector<8x32xf32>
    %65 = vector.extract_strided_slice %63 {offsets = [0, 32], sizes = [8, 32], strides = [1, 1]} : vector<8x128xf32> to vector<8x32xf32>
    %66 = vector.extract_strided_slice %59 {offsets = [0, 64], sizes = [8, 32], strides = [1, 1]} : vector<8x128xf32> to vector<8x32xf32>
    %67 = vector.extract_strided_slice %63 {offsets = [0, 96], sizes = [8, 32], strides = [1, 1]} : vector<8x128xf32> to vector<8x32xf32>
    %68 = arith.mulf %65, %53 : vector<8x32xf32>
    %69 = arith.mulf %64, %66 : vector<8x32xf32>
    %70 = arith.addf %68, %69 : vector<8x32xf32>
    %71 = math.tanh %70 : vector<8x32xf32>
    %72 = arith.mulf %67, %71 : vector<8x32xf32>
    %cst_19 = arith.constant dense<0.000000e+00> : vector<8x32xf32>
    %73 = tpu.matmul %72, %4, %cst_19 {dimension_numbers = #tpu.dot_dimension_numbers<[1], [0], [0], [1], [0, 0, 1, 1], [], []>} : vector<8x32xf32>, vector<32x32xf32>, vector<8x32xf32> -> vector<8x32xf32>
    %74 = vector.broadcast %5 : vector<1x32xf32> to vector<8x32xf32>
    %75 = arith.addf %73, %74 : vector<8x32xf32>
    %76 = math.tanh %75 : vector<8x32xf32>
    %cst_20 = arith.constant 5.000000e-01 : f32
    %77 = vector.broadcast %cst_20 : f32 to vector<8x32xf32>
    %78 = arith.mulf %77, %76 : vector<8x32xf32>
    %cst_21 = arith.constant 5.000000e-01 : f32
    %79 = vector.broadcast %cst_21 : f32 to vector<8x32xf32>
    %80 = arith.addf %78, %79 : vector<8x32xf32>
    %81 = vector.extract_strided_slice %80 {offsets = [0, 0], sizes = [8, 8], strides = [1, 1]} : vector<8x32xf32> to vector<8x8xf32>
    %82 = vector.extract_strided_slice %76 {offsets = [0, 16], sizes = [8, 8], strides = [1, 1]} : vector<8x32xf32> to vector<8x8xf32>
    %83 = vector.extract_strided_slice %80 {offsets = [0, 24], sizes = [8, 8], strides = [1, 1]} : vector<8x32xf32> to vector<8x8xf32>
    %84 = arith.mulf %81, %82 : vector<8x8xf32>
    %85 = math.tanh %84 : vector<8x8xf32>
    %86 = arith.mulf %83, %85 : vector<8x8xf32>
    %c88 = arith.constant 88 : index
    %c0_22 = arith.constant 0 : index
    %87 = vector.load %arg1[%c88, %c0_22] : memref<120x128xf32, #tpu.memory_space<vmem>>, vector<8x64xf32>
    %cst_23 = arith.constant dense<0.000000e+00> : vector<8x64xf32>
    %88 = tpu.matmul %86, %87, %cst_23 {dimension_numbers = #tpu.dot_dimension_numbers<[1], [0], [0], [1], [0, 0, 1, 1], [], []>} : vector<8x8xf32>, vector<8x64xf32>, vector<8x64xf32> -> vector<8x64xf32>
    %89 = vector.extract_strided_slice %88 {offsets = [0, 0], sizes = [8, 32], strides = [1, 1]} : vector<8x64xf32> to vector<8x32xf32>
    %90 = arith.addf %75, %89 : vector<8x32xf32>
    %91 = vector.extract_strided_slice %88 {offsets = [0, 32], sizes = [8, 32], strides = [1, 1]} : vector<8x64xf32> to vector<8x32xf32>
    %92 = vector.broadcast %6 : vector<1x32xf32> to vector<8x32xf32>
    %93 = arith.addf %92, %91 : vector<8x32xf32>
    %94 = math.tanh %90 : vector<8x32xf32>
    %cst_24 = arith.constant 5.000000e-01 : f32
    %95 = vector.broadcast %cst_24 : f32 to vector<8x32xf32>
    %96 = arith.mulf %95, %94 : vector<8x32xf32>
    %cst_25 = arith.constant 5.000000e-01 : f32
    %97 = vector.broadcast %cst_25 : f32 to vector<8x32xf32>
    %98 = arith.addf %96, %97 : vector<8x32xf32>
    %99 = vector.extract_strided_slice %98 {offsets = [0, 0], sizes = [8, 8], strides = [1, 1]} : vector<8x32xf32> to vector<8x8xf32>
    %100 = vector.extract_strided_slice %98 {offsets = [0, 8], sizes = [8, 8], strides = [1, 1]} : vector<8x32xf32> to vector<8x8xf32>
    %101 = vector.extract_strided_slice %94 {offsets = [0, 16], sizes = [8, 8], strides = [1, 1]} : vector<8x32xf32> to vector<8x8xf32>
    %102 = vector.extract_strided_slice %98 {offsets = [0, 24], sizes = [8, 8], strides = [1, 1]} : vector<8x32xf32> to vector<8x8xf32>
    %103 = arith.mulf %100, %84 : vector<8x8xf32>
    %104 = arith.mulf %99, %101 : vector<8x8xf32>
    %105 = arith.addf %103, %104 : vector<8x8xf32>
    %106 = math.tanh %105 : vector<8x8xf32>
    %107 = arith.mulf %102, %106 : vector<8x8xf32>
    %c96 = arith.constant 96 : index
    %c0_26 = arith.constant 0 : index
    %108 = vector.load %arg1[%c96, %c0_26] : memref<120x128xf32, #tpu.memory_space<vmem>>, vector<8x64xf32>
    %cst_27 = arith.constant dense<0.000000e+00> : vector<8x64xf32>
    %109 = tpu.matmul %107, %108, %cst_27 {dimension_numbers = #tpu.dot_dimension_numbers<[1], [0], [0], [1], [0, 0, 1, 1], [], []>} : vector<8x8xf32>, vector<8x64xf32>, vector<8x64xf32> -> vector<8x64xf32>
    %110 = vector.extract_strided_slice %109 {offsets = [0, 0], sizes = [8, 32], strides = [1, 1]} : vector<8x64xf32> to vector<8x32xf32>
    %111 = arith.addf %75, %110 : vector<8x32xf32>
    %112 = vector.extract_strided_slice %109 {offsets = [0, 32], sizes = [8, 32], strides = [1, 1]} : vector<8x64xf32> to vector<8x32xf32>
    %113 = arith.addf %93, %112 : vector<8x32xf32>
    %114 = math.tanh %111 : vector<8x32xf32>
    %cst_28 = arith.constant 5.000000e-01 : f32
    %115 = vector.broadcast %cst_28 : f32 to vector<8x32xf32>
    %116 = arith.mulf %115, %114 : vector<8x32xf32>
    %cst_29 = arith.constant 5.000000e-01 : f32
    %117 = vector.broadcast %cst_29 : f32 to vector<8x32xf32>
    %118 = arith.addf %116, %117 : vector<8x32xf32>
    %119 = vector.extract_strided_slice %118 {offsets = [0, 0], sizes = [8, 8], strides = [1, 1]} : vector<8x32xf32> to vector<8x8xf32>
    %120 = vector.extract_strided_slice %118 {offsets = [0, 8], sizes = [8, 8], strides = [1, 1]} : vector<8x32xf32> to vector<8x8xf32>
    %121 = vector.extract_strided_slice %114 {offsets = [0, 16], sizes = [8, 8], strides = [1, 1]} : vector<8x32xf32> to vector<8x8xf32>
    %122 = vector.extract_strided_slice %118 {offsets = [0, 24], sizes = [8, 8], strides = [1, 1]} : vector<8x32xf32> to vector<8x8xf32>
    %123 = arith.mulf %120, %105 : vector<8x8xf32>
    %124 = arith.mulf %119, %121 : vector<8x8xf32>
    %125 = arith.addf %123, %124 : vector<8x8xf32>
    %126 = math.tanh %125 : vector<8x8xf32>
    %127 = arith.mulf %122, %126 : vector<8x8xf32>
    %c104 = arith.constant 104 : index
    %c0_30 = arith.constant 0 : index
    %128 = vector.load %arg1[%c104, %c0_30] : memref<120x128xf32, #tpu.memory_space<vmem>>, vector<8x64xf32>
    %cst_31 = arith.constant dense<0.000000e+00> : vector<8x64xf32>
    %129 = tpu.matmul %127, %128, %cst_31 {dimension_numbers = #tpu.dot_dimension_numbers<[1], [0], [0], [1], [0, 0, 1, 1], [], []>} : vector<8x8xf32>, vector<8x64xf32>, vector<8x64xf32> -> vector<8x64xf32>
    %130 = vector.extract_strided_slice %129 {offsets = [0, 0], sizes = [8, 32], strides = [1, 1]} : vector<8x64xf32> to vector<8x32xf32>
    %131 = arith.addf %75, %130 : vector<8x32xf32>
    %132 = vector.extract_strided_slice %129 {offsets = [0, 32], sizes = [8, 32], strides = [1, 1]} : vector<8x64xf32> to vector<8x32xf32>
    %133 = arith.addf %113, %132 : vector<8x32xf32>
    %134 = math.tanh %131 : vector<8x32xf32>
    %cst_32 = arith.constant 5.000000e-01 : f32
    %135 = vector.broadcast %cst_32 : f32 to vector<8x32xf32>
    %136 = arith.mulf %135, %134 : vector<8x32xf32>
    %cst_33 = arith.constant 5.000000e-01 : f32
    %137 = vector.broadcast %cst_33 : f32 to vector<8x32xf32>
    %138 = arith.addf %136, %137 : vector<8x32xf32>
    %139 = vector.extract_strided_slice %138 {offsets = [0, 0], sizes = [8, 8], strides = [1, 1]} : vector<8x32xf32> to vector<8x8xf32>
    %140 = vector.extract_strided_slice %138 {offsets = [0, 8], sizes = [8, 8], strides = [1, 1]} : vector<8x32xf32> to vector<8x8xf32>
    %141 = vector.extract_strided_slice %134 {offsets = [0, 16], sizes = [8, 8], strides = [1, 1]} : vector<8x32xf32> to vector<8x8xf32>
    %142 = vector.extract_strided_slice %138 {offsets = [0, 24], sizes = [8, 8], strides = [1, 1]} : vector<8x32xf32> to vector<8x8xf32>
    %143 = arith.mulf %140, %125 : vector<8x8xf32>
    %144 = arith.mulf %139, %141 : vector<8x8xf32>
    %145 = arith.addf %143, %144 : vector<8x8xf32>
    %146 = math.tanh %145 : vector<8x8xf32>
    %147 = arith.mulf %142, %146 : vector<8x8xf32>
    %c112 = arith.constant 112 : index
    %c0_34 = arith.constant 0 : index
    %148 = vector.load %arg1[%c112, %c0_34] : memref<120x128xf32, #tpu.memory_space<vmem>>, vector<8x32xf32>
    %cst_35 = arith.constant dense<0.000000e+00> : vector<8x32xf32>
    %149 = tpu.matmul %147, %148, %cst_35 {dimension_numbers = #tpu.dot_dimension_numbers<[1], [0], [0], [1], [0, 0, 1, 1], [], []>} : vector<8x8xf32>, vector<8x32xf32>, vector<8x32xf32> -> vector<8x32xf32>
    %150 = arith.addf %133, %149 : vector<8x32xf32>
    %c0_36 = arith.constant 0 : index
    %c0_37 = arith.constant 0 : index
    %151 = vector.load %arg2[%c0_36, %c0_37] : memref<8x32xf32, #tpu.memory_space<vmem>>, vector<8x32xf32>
    tpu.vector_store %arg2[%c0_36, %c0_37], %150 {strides = array<i32>} : memref<8x32xf32, #tpu.memory_space<vmem>>, vector<8x32xf32>,
    return
  }
}

</mosaic_0001>

<bundles_post_ra>
// kernel: tpu_custom_call.1
= control target key start
LH: loop header
LB: loop body
LE: loop exit
PB: predicated region body
PF: predicated region fallthrough
CT: control target
= control target key end

     0   :  { %7 = vsyncpa [#allocation3], 0  ;;  %s1346_s0 = inlined_call_operand.vmem [shape: f32[32,8], index: 0, kind: input, shape index: {}]   ;;  %s1347_s1 = inlined_call_operand.hbm [shape: f32[120,128], index: 1, kind: input, shape index: {}]   ;;  %s1348_s2 = inlined_call_operand.hbm [shape: f32[8,32], index: 2, kind: output, shape index: {}]  }
   0x1   :  { %8 = vsyncpa [#allocation4], 0  ;;  %s1189_s9 = smov [#allocation2]   ;;  %s1141_s13 = scalar_lea.hbm %s1347_s1, 1920 }
   0x2   :  { %s16_s10 = sshll.u32 %s1189_s9, 4  ;;  %p1142_p0 = scmp.ne.s32.totalorder %s1347_s1, %s1141_s13  ;;  %s17_s10 = int_to_ptr.vmem [resolvable:$true] %s16_s10 }
   0x3   :  { %p1145_p1 = scmp.lt.u32.totalorder %s1141_s13, %s1347_s1 }
   0x5   :  { %p1147_p2 = pnand %p1145_p1, %p1142_p0 }
   0x7   :  { %1150 = shalt.err (!%p1147_p2)
}
   0x8   :  { %s1151_s18 = scalar_lea.vmem %s17_s10, 1920  ;;  %p1156_p4 = scmp.lt.s32.totalorder %s17_s10, %s17_s10 }
   0x9   :  { %p1152_p3 = scmp.ne.s32.totalorder %s17_s10, %s1151_s18  ;;  %p1157_p5 = scmp.lt.s32.totalorder %s1151_s18, %s1151_s18 }
   0xb   :  { %p1158_p6 = por %p1157_p5, %p1156_p4 }
   0xd   :  { %p1159_p7 = pnand %p1158_p6, %p1152_p3 }
   0xf   :  { %1162 = shalt.err (!%p1159_p7)
}
  0x10   :  { %s1190_s19 = smov 128   ;;  %s1191_s20 = smov 8  }
  0x11   :  { %22 = dma.hbm_to_vmem [thread:$0]  %s1347_s1, 1920, %s17_s10, [#allocation3], %s1190_s19, %s1190_s19, %s1191_s20  }
  0x12   :  { %1185 = dma.done.wait [#allocation3], 1920  }
  0x13   :  { %1186 = vsyncadd [#allocation3], 4294965376  ;;  %vm46_vm0 = vcmask 64512   ;;  %v30_v0 = vld [vmem:[#allocation2] sm:$0xff]  ;;  %v27_v2 = vld [vmem:[%s1346_s0 + $0x8] sm:$0xff]  ;;  %s1192_s1 = smov 64  }
  0x14   :  { %v26_v1 = vld [vmem:[%s1346_s0] sm:$0xff]  ;;  %999 = vmatprep.subr.mxu0 %v30_v0  ;;  %v1239_v3 = vld [vmem:[#allocation2 + $0x28] ss:$0 sm:$0xff]  ;;  %v32_v13 = vld [vmem:[#allocation2 + $0x10] sm:$0xff]  ;;  %v1193_v15 = vmov 0.0|0.0   ;;  %vm1194_vm1 = vmmov 0  }
  0x15   :  { %1001 = vmatprep.mubr.msk.f32.mxu0 %vm46_vm0, %v26_v1  ;;  %1000 = vmatpush3.msra.mxu0 %v30_v0  ;;  %v31_v12 = vld [vmem:[#allocation2 + $0x8] sm:$0xff]  ;;  %v33_v14 = vld [vmem:[#allocation2 + $0x18] sm:$0xff]  ;;  %v34_v17 = vld [vmem:[#allocation2 + $0x20] sm:$0xff]  ;;  %v1195_v18 = vmov 0.0   ;;  %s1196_s27 = smov 96   ;;  %s1197_s28 = smov 32  }
  0x16   :  { %1002 = vmatmul.mubr.msk.f32.vlgmr.msra.gmra.mrb[0].mxu0 %vm46_vm0, %v27_v2  ;;  %1071 = vmatprep.subr.bf16.mxu1 %v1193_v15  ;;  %v1072_v16 = vpack.c.bf16 %v32_v13, %v31_v12  ;;  %v1075_v19 = vpack.c.bf16 %v34_v17, %v33_v14  ;;  %vm161_vm2 = vcmask 261120   ;;  %v28_v37 = vld [vmem:[%s1346_s0 + $0x10] sm:$0xff]  ;;  %v29_v38 = vld [vmem:[%s1346_s0 + $0x18] sm:$0xff]  ;;  %v39_v13 = vld [vmem:[#allocation2 + $0x48] sm:$0xff]  ;;  %s1198_s0 = smov 112   ;;  %s1199_s5 = smov 24  }
  0x17   :  { %1015 = vmatprep.mubr.msk.f32.mxu1 %vm1194_vm1, %v1195_v18  ;;  %1077 = vmatprep.subr.bf16.mxu0 %v1193_v15  ;;  %s1200_s6 = smov 104   ;;  %s1201_s7 = smov 16  }
  0x18   :  { %1073 = vmatpush3.bf16.msra.mxu1 %v1072_v16  ;;  %1079 = vmatpush3.bf16.msra.mxu0 %v1072_v16  ;;  %s1202_s8 = smov [#allocation5]  }
  0x19   :  { %1074 = vmatprep.subr.bf16.mxu1 %v1193_v15  ;;  %1080 = vmatprep.subr.bf16.mxu0 %v1193_v15  ;;  %s942_s9 = sshll.u32 %s1202_s8, 4  ;;  %s943_s9 = int_to_ptr.vmem [resolvable:$true] %s942_s9 }
  0x1a   :  { %1004 = vmatprep.mubr.msk.f32.mxu0 %vm46_vm0, %v28_v37  ;;  %s1163_s10 = scalar_lea.vmem %s943_s9, 128  ;;  %p1168_p9 = scmp.lt.s32.totalorder %s943_s9, %s943_s9 }
  0x1b   :  { %1005 = vmatmul.mubr.msk.f32.gmra.mrb[2].mxu0 %vm46_vm0, %v29_v38  ;;  %p1164_p8 = scmp.ne.s32.totalorder %s943_s9, %s1163_s10  ;;  %p1169_p10 = scmp.lt.s32.totalorder %s1163_s10, %s1163_s10 }
  0x1c   :  { %1076 = vmatpush3.bf16.msra.mxu1 %v1075_v19  ;;  %1082 = vmatpush3.bf16.msra.mxu0 %v1075_v19 }
  0x1d   :  { %1083 = vmatprep.subr.bf16.mxu1 %v1193_v15  ;;  %1089 = vmatprep.subr.bf16.mxu0 %v1193_v15  ;;  %p1170_p11 = por %p1169_p10, %p1168_p9 }
  0x1e   :  { %1026 = vmatprep.mubr.msk.f32.mxu0 %vm1194_vm1, %v1195_v18 }
  0x1f   :  { %p1171_p12 = pnand %p1170_p11, %p1164_p8 }
  0xe9   :  { %v1003_v4 = vpop.f32.mrb[0].mxu0 }
  0xea   :  { %v125_v5 = vpop.f32.mrb[1].mxu0  ;;  %v131_v24 = vadd.f32 %v1003_v4, %v1239_v3 }
  0xeb   :  { %v126_v6 = vadd.f32 %v1239_v3, %v125_v5 }
  0xed   :  { %1109 = vtanh.f32 %v126_v6 }
  0xee   :  { %v1006_v42 = vpop.f32.mrb[2].mxu0 }
  0xef   :  { %v135_v43 = vpop.f32.mrb[3].mxu0  ;;  %v141_v61 = vadd.f32 %v1006_v42, %v1239_v3 }
  0xf0   :  { %v136_v45 = vadd.f32 %v1239_v3, %v135_v43  ;;  %v38_v3 = vld [vmem:[#allocation2 + $0x40] sm:$0xff] }
  0xf1   :  { %v1093_v14 = vpack.c.bf16 %v39_v13, %v38_v3  ;;  %v858_v13 = vld [vmem:[#allocation2 + $0x70] sm:$0xff] }
  0xf7   :  { %v1110_v7 = vpop.eup %1109 }
  0xf8   :  { %148 = vrot.lane.b32.xlu0 %v1110_v7, %s1192_s1  ;;  %v145_v8 = vmul.f32 0.5, %v1110_v7 }
  0xfa   :  { %v146_v9 = vadd.f32 0.5, %v145_v8 }
 0x16a   :  { %v149_v10 = vpop.permute.xlu0 %148 }
 0x16b   :  { %v151_v11 = vmul.f32 %v149_v10, %v146_v9  ;;  %v36_v10 = vld [vmem:[#allocation2 + $0x30] sm:$0xff] }
 0x16d   :  { %1111 = vtanh.f32 %v151_v11 }
 0x177   :  { %v1112_v20 = vpop.eup %1111 }
 0x178   :  { %154 = vrot.lane.b32.xlu0 %v1112_v20, %s1196_s27 }
 0x17c   :  { %239 = vrot.lane.b32.xlu0 %v151_v11, %s1197_s28  ;;  %v37_v11 = vld [vmem:[#allocation2 + $0x38] sm:$0xff] }
 0x17d   :  { %v1090_v12 = vpack.c.bf16 %v37_v11, %v36_v10 }
 0x1ea   :  { %v155_v21 = vpop.permute.xlu0 %154 }
 0x1eb   :  { %v157_v22 = vmul.f32 %v155_v21, %v146_v9  ;;  %v959_v21 = vld [vmem:[#allocation2 + $0x50] ss:$0 sm:$0xff] }
 0x1ed   :  { %159 = vrot.lane.b32.xlu1 %v157_v22, %s1197_s28 }
 0x1ee   :  { %v240_v33 = vpop.permute.xlu0 %239 }
 0x25f   :  { %v160_v23 = vpop.permute.xlu1 %159 }
 0x260   :  { %1016 = vmatmul.mubr.msk.f32.vlgmr.msra.gmra.mrb[0].mxu1 %vm161_vm2, %v160_v23 }
 0x261   :  { %1085 = vmatpush3.bf16.msra.mxu1 %v1072_v16  ;;  %1037 = vmatprep.mubr.msk.f32.mxu1 %vm1194_vm1, %v1195_v18 }
 0x262   :  { %1086 = vmatprep.subr.bf16.mxu1 %v1193_v15 }
 0x265   :  { %1088 = vmatpush3.bf16.msra.mxu1 %v1075_v19 }
 0x266   :  { %1051 = vmatprep.subr.mxu1 %v1195_v18 }
 0x333   :  { %v230_v25 = vpop.f32.mrb[0].mxu1 }
 0x334   :  { %v234_v26 = vadd.f32 %v230_v25, %v131_v24  ;;  %v1017_v27 = vpop.f32.mrb[1].mxu1 }
 0x336   :  { %1113 = vtanh.f32 %v234_v26 }
 0x340   :  { %v1114_v28 = vpop.eup %1113 }
 0x341   :  { %244 = vrot.lane.b32.xlu1 %v1114_v28, %s1192_s1  ;;  %v236_v29 = vmul.f32 0.5, %v1114_v28 }
 0x343   :  { %v237_v30 = vadd.f32 0.5, %v236_v29  ;;  %v544_v29 = vld [vmem:[#allocation2 + $0x58] sm:$0xff] }
 0x345   :  { %v242_v34 = vmul.f32 %v240_v33, %v237_v30 }
 0x3b3   :  { %v245_v31 = vpop.permute.xlu1 %244 }
 0x3b4   :  { %v247_v32 = vmul.f32 %v245_v31, %v237_v30 }
 0x3b6   :  { %249 = vrot.lane.b32.xlu1 %v247_v32, %s1197_s28 }
 0x428   :  { %v250_v35 = vpop.permute.xlu1 %249 }
 0x429   :  { %v252_v36 = vadd.f32 %v250_v35, %v242_v34 }
 0x42b   :  { %1115 = vtanh.f32 %v252_v36 }
 0x435   :  { %v1116_v39 = vpop.eup %1115 }
 0x436   :  { %255 = vrot.lane.b32.xlu0 %v1116_v39, %s1192_s1 }
 0x4a8   :  { %v256_v40 = vpop.permute.xlu0 %255 }
 0x4a9   :  { %v258_v41 = vmul.f32 %v256_v40, %v237_v30 }
 0x4ab   :  { %260 = vrot.lane.b32.xlu1 %v258_v41, %s1197_s28 }
 0x51d   :  { %v261_v44 = vpop.permute.xlu1 %260 }
 0x51e   :  { %1027 = vmatmul.mubr.msk.f32.vlgmr.msra.gmra.mrb[4].mxu0 %vm161_vm2, %v261_v44 }
 0x51f   :  { %1048 = vmatprep.mubr.msk.f32.mxu0 %vm1194_vm1, %v1195_v18  ;;  %1091 = vmatpush3.bf16.msra.mxu0 %v1090_v12 }
 0x520   :  { %1092 = vmatprep.subr.bf16.mxu0 %v1193_v15 }
 0x523   :  { %1094 = vmatpush3.bf16.msra.mxu0 %v1093_v14 }
 0x524   :  { %1056 = vmatprep.subr.mxu0 %v1195_v18 }
 0x5f1   :  { %v330_v46 = vpop.f32.mrb[4].mxu0 }
 0x5f2   :  { %v334_v47 = vadd.f32 %v330_v46, %v136_v45  ;;  %v1028_v48 = vpop.f32.mrb[5].mxu0  ;;  %v654_v46 = vld [vmem:[#allocation2 + $0x60] sm:$0xff] }
 0x5f4   :  { %1117 = vtanh.f32 %v334_v47 }
 0x5fe   :  { %v1118_v49 = vpop.eup %1117 }
 0x5ff   :  { %340 = vrot.lane.b32.xlu0 %v1118_v49, %s1192_s1  ;;  %v336_v50 = vmul.f32 0.5, %v1118_v49 }
 0x601   :  { %v337_v51 = vadd.f32 0.5, %v336_v50 }
 0x603   :  { %v338_v54 = vmul.f32 %v337_v51, %v252_v36 }
 0x671   :  { %v341_v52 = vpop.permute.xlu0 %340 }
 0x672   :  { %v343_v53 = vmul.f32 %v341_v52, %v337_v51 }
 0x674   :  { %345 = vrot.lane.b32.xlu1 %v343_v53, %s1197_s28 }
 0x6e6   :  { %v346_v55 = vpop.permute.xlu1 %345 }
 0x6e7   :  { %v348_v56 = vadd.f32 %v346_v55, %v338_v54 }
 0x6e9   :  { %1119 = vtanh.f32 %v348_v56 }
 0x6f3   :  { %v1120_v57 = vpop.eup %1119 }
 0x6f4   :  { %351 = vrot.lane.b32.xlu0 %v1120_v57, %s1192_s1 }
 0x766   :  { %v352_v58 = vpop.permute.xlu0 %351 }
 0x767   :  { %v354_v59 = vmul.f32 %v352_v58, %v337_v51 }
 0x769   :  { %356 = vrot.lane.b32.xlu1 %v354_v59, %s1197_s28 }
 0x7db   :  { %v357_v60 = vpop.permute.xlu1 %356 }
 0x7dc   :  { %1038 = vmatmul.mubr.msk.f32.vlgmr.msra.gmra.mrb[2].mxu1 %vm161_vm2, %v357_v60 }
 0x7dd   :  { %1053 = vmatprep.mubr.msk.f32.mxu1 %vm1194_vm1, %v1195_v18  ;;  %1052 = vmatpush3.msra.mxu1 %v544_v29 }
 0x7de   :  { %1061 = vmatprep.subr.mxu1 %v1195_v18 }
 0x8af   :  { %v426_v62 = vpop.f32.mrb[2].mxu1 }
 0x8b0   :  { %v430_v63 = vadd.f32 %v426_v62, %v141_v61  ;;  %v1039_v0 = vpop.f32.mrb[3].mxu1  ;;  %v756_v62 = vld [vmem:[#allocation2 + $0x68] sm:$0xff] }
 0x8b2   :  { %1121 = vtanh.f32 %v430_v63 }
 0x8bc   :  { %v1122_v1 = vpop.eup %1121 }
 0x8bd   :  { %436 = vrot.lane.b32.xlu0 %v1122_v1, %s1192_s1  ;;  %v432_v2 = vmul.f32 0.5, %v1122_v1 }
 0x8bf   :  { %v433_v4 = vadd.f32 0.5, %v432_v2 }
 0x8c1   :  { %v434_v7 = vmul.f32 %v433_v4, %v348_v56 }
 0x92f   :  { %v437_v5 = vpop.permute.xlu0 %436 }
 0x930   :  { %v439_v6 = vmul.f32 %v437_v5, %v433_v4 }
 0x932   :  { %441 = vrot.lane.b32.xlu1 %v439_v6, %s1197_s28 }
 0x9a4   :  { %v442_v8 = vpop.permute.xlu1 %441 }
 0x9a5   :  { %v444_v9 = vadd.f32 %v442_v8, %v434_v7 }
 0x9a7   :  { %1123 = vtanh.f32 %v444_v9 }
 0x9b1   :  { %v1124_v16 = vpop.eup %1123 }
 0x9b2   :  { %447 = vrot.lane.b32.xlu0 %v1124_v16, %s1192_s1 }
 0xa24   :  { %v448_v17 = vpop.permute.xlu0 %447 }
 0xa25   :  { %v450_v19 = vmul.f32 %v448_v17, %v433_v4 }
 0xa27   :  { %456 = vrot.lane.b32.xlu1 %v450_v19, %s1197_s28 }
 0xa99   :  { %v457_v20 = vpop.permute.xlu1 %456 }
 0xa9a   :  { %1049 = vmatmul.mubr.msk.f32.vlgmr.msra.gmra.mrb[6].mxu0 %vm161_vm2, %v457_v20  ;;  %v962_v20 = vld [vmem:[#allocation2 + $0x51] ss:$0 sm:$0xff] }
 0xa9b   :  { %1058 = vmatprep.mubr.msk.f32.mxu0 %vm1194_vm1, %v1195_v18  ;;  %1057 = vmatpush3.msra.mxu0 %v654_v46 }
 0xa9c   :  { %1066 = vmatprep.subr.mxu0 %v1195_v18 }
 0xb6d   :  { %v526_v22 = vpop.f32.mrb[6].mxu0 }
 0xb6e   :  { %v1295_v23 = vadd.f32 %v959_v21, %v526_v22  ;;  %v1050_v15 = vpop.f32.mrb[7].mxu0 }
 0xb70   :  { %1125 = vtanh.f32 %v1295_v23 }
 0xb7a   :  { %v1126_v24 = vpop.eup %1125 }
 0xb7b   :  { %534 = vrot.lane.b32.xlu0 %v1126_v24, %s1198_s0  ;;  %v531_v25 = vmul.f32 0.5, %v1126_v24 }
 0xb7d   :  { %v532_v26 = vadd.f32 0.5, %v531_v25 }
 0xbed   :  { %v535_v27 = vpop.permute.xlu0 %534 }
 0xbee   :  { %v537_v28 = vmul.f32 %v535_v27, %v532_v26 }
 0xbf0   :  { %1127 = vtanh.f32 %v537_v28 }
 0xbfa   :  { %v1128_v30 = vpop.eup %1127 }
 0xbfb   :  { %540 = vrot.lane.b32.xlu1 %v1128_v30, %s1199_s5 }
 0xc6d   :  { %v541_v31 = vpop.permute.xlu1 %540 }
 0xc6e   :  { %v543_v32 = vmul.f32 %v541_v31, %v532_v26 }
 0xc70   :  { %546 = vrot.lane.b32.xlu0 %v543_v32, %s1200_s6 }
 0xc74   :  { %634 = vrot.lane.b32.xlu0 %v537_v28, %s1191_s20 }
 0xce2   :  { %v547_v33 = vpop.permute.xlu0 %546 }
 0xce3   :  { %1054 = vmatmul.mubr.msk.f32.vlgmr.msra.gmra.mrb[4].mxu1 %vm46_vm0, %v547_v33 }
 0xce4   :  { %1063 = vmatprep.mubr.msk.f32.mxu1 %vm1194_vm1, %v1195_v18  ;;  %1062 = vmatpush3.msra.mxu1 %v756_v62 }
 0xce6   :  { %v635_v42 = vpop.permute.xlu0 %634 }
 0xdb6   :  { %v1305_v34 = vpop.f32.mrb[4].mxu1 }
 0xdb7   :  { %v620_v35 = vadd.f32 %v1305_v34, %v1295_v23  ;;  %v1055_v36 = vpop.f32.mrb[5].mxu1 }
 0xdb9   :  { %1129 = vtanh.f32 %v620_v35 }
 0xdc3   :  { %v1130_v37 = vpop.eup %1129 }
 0xdc4   :  { %639 = vrot.lane.b32.xlu1 %v1130_v37, %s1198_s0  ;;  %v631_v38 = vmul.f32 0.5, %v1130_v37 }
 0xdc6   :  { %v632_v39 = vadd.f32 0.5, %v631_v38 }
 0xdc8   :  { %v637_v43 = vmul.f32 %v635_v42, %v632_v39 }
 0xe36   :  { %v640_v40 = vpop.permute.xlu1 %639 }
 0xe37   :  { %v642_v41 = vmul.f32 %v640_v40, %v632_v39 }
 0xe39   :  { %644 = vrot.lane.b32.xlu1 %v642_v41, %s1191_s20 }
 0xeab   :  { %v645_v44 = vpop.permute.xlu1 %644 }
 0xeac   :  { %v647_v45 = vadd.f32 %v645_v44, %v637_v43 }
 0xeae   :  { %1131 = vtanh.f32 %v647_v45 }
 0xeb8   :  { %v1132_v47 = vpop.eup %1131 }
 0xeb9   :  { %650 = vrot.lane.b32.xlu0 %v1132_v47, %s1201_s7 }
 0xf2b   :  { %v651_v48 = vpop.permute.xlu0 %650 }
 0xf2c   :  { %v653_v49 = vmul.f32 %v651_v48, %v632_v39 }
 0xf2e   :  { %656 = vrot.lane.b32.xlu1 %v653_v49, %s1200_s6 }
 0xfa0   :  { %v657_v50 = vpop.permute.xlu1 %656 }
 0xfa1   :  { %1059 = vmatmul.mubr.msk.f32.vlgmr.msra.gmra.mrb[8].mxu0 %vm46_vm0, %v657_v50 }
 0xfa2   :  { %1068 = vmatprep.mubr.msk.f32.mxu0 %vm1194_vm1, %v1195_v18  ;;  %1067 = vmatpush3.msra.mxu0 %v858_v13 }
0x1074   :  { %v726_v51 = vpop.f32.mrb[8].mxu0 }
0x1075   :  { %v730_v52 = vadd.f32 %v726_v51, %v1295_v23  ;;  %v1060_v53 = vpop.f32.mrb[9].mxu0 }
0x1077   :  { %1133 = vtanh.f32 %v730_v52 }
0x1081   :  { %v1134_v54 = vpop.eup %1133 }
0x1082   :  { %741 = vrot.lane.b32.xlu0 %v1134_v54, %s1198_s0  ;;  %v737_v55 = vmul.f32 0.5, %v1134_v54 }
0x1084   :  { %v738_v56 = vadd.f32 0.5, %v737_v55 }
0x1086   :  { %v739_v59 = vmul.f32 %v738_v56, %v647_v45 }
0x10f4   :  { %v742_v57 = vpop.permute.xlu0 %741 }
0x10f5   :  { %v744_v58 = vmul.f32 %v742_v57, %v738_v56 }
0x10f7   :  { %746 = vrot.lane.b32.xlu1 %v744_v58, %s1191_s20 }
0x1169   :  { %v747_v60 = vpop.permute.xlu1 %746 }
0x116a   :  { %v749_v61 = vadd.f32 %v747_v60, %v739_v59 }
0x116c   :  { %1135 = vtanh.f32 %v749_v61 }
0x1176   :  { %v1136_v18 = vpop.eup %1135 }
0x1177   :  { %752 = vrot.lane.b32.xlu0 %v1136_v18, %s1201_s7 }
0x11e9   :  { %v753_v63 = vpop.permute.xlu0 %752 }
0x11ea   :  { %v755_v0 = vmul.f32 %v753_v63, %v738_v56 }
0x11ec   :  { %758 = vrot.lane.b32.xlu1 %v755_v0, %s1200_s6 }
0x125e   :  { %v759_v1 = vpop.permute.xlu1 %758 }
0x125f   :  { %1064 = vmatmul.mubr.msk.f32.vlgmr.msra.gmra.mrb[6].mxu1 %vm46_vm0, %v759_v1 }
0x1332   :  { %v828_v2 = vpop.f32.mrb[6].mxu1 }
0x1333   :  { %v832_v4 = vadd.f32 %v828_v2, %v1295_v23  ;;  %v1065_v5 = vpop.f32.mrb[7].mxu1 }
0x1335   :  { %1137 = vtanh.f32 %v832_v4 }
0x133f   :  { %v1138_v6 = vpop.eup %1137 }
0x1340   :  { %843 = vrot.lane.b32.xlu0 %v1138_v6, %s1198_s0  ;;  %v839_v7 = vmul.f32 0.5, %v1138_v6 }
0x1342   :  { %v840_v8 = vadd.f32 0.5, %v839_v7 }
0x1344   :  { %v841_v11 = vmul.f32 %v840_v8, %v749_v61 }
0x13b2   :  { %v844_v9 = vpop.permute.xlu0 %843 }
0x13b3   :  { %v846_v10 = vmul.f32 %v844_v9, %v840_v8 }
0x13b5   :  { %848 = vrot.lane.b32.xlu1 %v846_v10, %s1191_s20 }
0x1427   :  { %v849_v3 = vpop.permute.xlu1 %848 }
0x1428   :  { %v851_v12 = vadd.f32 %v849_v3, %v841_v11 }
0x142a   :  { %1139 = vtanh.f32 %v851_v12 }
0x1434   :  { %v1140_v14 = vpop.eup %1139 }
0x1435   :  { %854 = vrot.lane.b32.xlu0 %v1140_v14, %s1201_s7 }
0x1439   :  { %626 = vrot.lane.b32.xlu0 %v1305_v34, %s1196_s27 }
0x143d   :  { %834 = vrot.lane.b32.xlu0 %v828_v2, %s1196_s27 }
0x14a7   :  { %v855_v16 = vpop.permute.xlu0 %854 }
0x14a8   :  { %v857_v17 = vmul.f32 %v855_v16, %v840_v8 }
0x14aa   :  { %860 = vrot.lane.b32.xlu1 %v857_v17, %s1200_s6 }
0x14ab   :  { %v627_v21 = vpop.permute.xlu0 %626 }
0x14ac   :  { %v629_v23 = vadd.f32 %v962_v20, %v627_v21 }
0x14ae   :  { %732 = vrot.lane.b32.xlu1 %v726_v51, %s1196_s27 }
0x14af   :  { %v835_v24 = vpop.permute.xlu0 %834 }
0x151c   :  { %v861_v19 = vpop.permute.xlu1 %860 }
0x151d   :  { %1069 = vmatmul.mubr.msk.f32.vlgmr.msra.gmra.mrb[10].mxu0 %vm46_vm0, %v861_v19 }
0x1520   :  { %v733_v22 = vpop.permute.xlu1 %732 }
0x1521   :  { %v735_v15 = vadd.f32 %v733_v22, %v629_v23 }
0x1523   :  { %v837_v25 = vadd.f32 %v835_v24, %v735_v15 }
0x15f0   :  { %v930_v26 = vpop.f32.mrb[10].mxu0 }
0x15f1   :  { %v934_v27 = vadd.f32 %v930_v26, %v837_v25  ;;  %v1070_v28 = vpop.f32.mrb[11].mxu0 }
0x15f3   :  { %935 = vst.msk [vmem:[#allocation5] sm:$0xff] %vm161_vm2, %v934_v27 }
0x15f4   :  { %1174 = shalt.err (!%p1171_p12)
}
0x15f5   :  { %s1175_s13 = scalar_lea.hbm %s1348_s2, 128 }
0x15f6   :  { %p1176_p13 = scmp.ne.s32.totalorder %s1348_s2, %s1175_s13  ;;  %p1179_p0 = scmp.lt.u32.totalorder %s1175_s13, %s1348_s2 }
0x15f8   :  { %p1181_p1 = pnand %p1179_p0, %p1176_p13 }
0x15fa   :  { %1184 = shalt.err (!%p1181_p1)
}
0x15fb   :  { %945 = dma.vmem_to_hbm [thread:$0]  %s943_s9, 128, %s1348_s2, [#allocation4]  }
0x15fc   :  { %1187 = dma.done.wait [#allocation4], 128  }
0x15fd   :  { %1188 = vsyncadd [#allocation4], 4294967168 }
0x15fe   :  { %949 = vsyncpa [#allocation3], 1 }
0x15ff   :  { %950 = vsyncpa [#allocation4], 1 }

</bundles_post_ra>
